<compile_context>
chip_gen: v7x
topology: tpu7x:2x2x1
jax: 0.10.0
libtpu: 0.0.40
codegen_flags: <defaults>
</compile_context>

<pallas_src>
import jax
import jax.numpy as jnp
import numpy as np
from jax import lax
from jax.experimental import pallas as pl
from jax.experimental.pallas import tpu as pltpu


def _round_up(x, m):
    return ((x + m - 1) // m) * m


def _pick_tile(size_pad, unit, max_tile):
    """Largest multiple of `unit` that divides `size_pad` and is <= max_tile."""
    n_units = size_pad // unit
    best = 1
    for b in range(1, n_units + 1):
        if n_units % b == 0 and b * unit <= max_tile:
            best = b
    return best * unit


# --------------------------------------------------------------------------
# Kernels
# --------------------------------------------------------------------------

def qlinear_single_k_kernel(x_ref, w_ref, ss_ref, o_ref):
    """Fused x @ W.T + per-channel dequant, whole K resident (no accumulator).

    x_ref : [tm, K]  bf16
    w_ref : [tn, K]  int8  (quantized values; upcast in-kernel)
    ss_ref: [2,  tn] f32   (row 0 = dequant scale, row 1 = bias * scale)
    """
    acc = lax.dot_general(
        x_ref[...],
        w_ref[...].astype(x_ref.dtype),
        dimension_numbers=(((1,), (1,)), ((), ())),
        preferred_element_type=jnp.float32,
    )
    s = ss_ref[pl.ds(0, 1), :]    # [1, tn]
    bs = ss_ref[pl.ds(1, 1), :]   # [1, tn]
    # (acc + bias) * scale  ==  acc * scale + bias * scale
    o_ref[...] = (acc * s + bs).astype(o_ref.dtype)


def qlinear_acc_kernel(x_ref, w_ref, ss_ref, o_ref, acc_ref):
    """Same as above but with a K reduction grid axis + f32 accumulator.

    grid = (i over M [parallel], j over N [parallel], k over K [arbitrary]).
    """
    k = pl.program_id(2)

    @pl.when(k == 0)
    def _():
        acc_ref[...] = jnp.zeros_like(acc_ref)

    acc_ref[...] += lax.dot_general(
        x_ref[...],
        w_ref[...].astype(x_ref.dtype),
        dimension_numbers=(((1,), (1,)), ((), ())),
        preferred_element_type=jnp.float32,
    )

    @pl.when(k == pl.num_programs(2) - 1)
    def _():
        s = ss_ref[pl.ds(0, 1), :]
        bs = ss_ref[pl.ds(1, 1), :]
        o_ref[...] = (acc_ref[...] * s + bs).astype(o_ref.dtype)


# --------------------------------------------------------------------------
# One-time parameter packing (done at quantize / load time, NOT per call)
# --------------------------------------------------------------------------

def prepare_qlinear_params(weight_q, bias, scale, *, tn_max=512, tk_max=2048):
    """Pack quantized-linear params once.

    weight_q: [N, K] quantized weight values (int8-valued, any float/int dtype)
    bias:     [N] or None
    scale:    [N] (per-out-channel) or scalar (per-tensor) dequant scale
    """
    N, K = weight_q.shape
    N_pad = _round_up(N, 128)
    K_pad = _round_up(K, 128)

    # Quantized values are small integers -> exact in int8.  Streaming int8
    # from HBM halves weight traffic; the kernel upcasts to bf16 in VMEM.
    w_i8 = jnp.round(weight_q.astype(jnp.float32)).astype(jnp.int8)
    if (N_pad, K_pad) != (N, K):
        w_i8 = jnp.pad(w_i8, ((0, N_pad - N), (0, K_pad - K)))

    s32 = jnp.broadcast_to(jnp.asarray(scale, jnp.float32).reshape(-1), (N,))
    if bias is None:
        bs = jnp.zeros_like(s32)
    else:
        bs = bias.astype(jnp.float32) * s32
    ss = jnp.stack([s32, bs], axis=0)                       # [2, N]
    if N_pad != N:
        ss = jnp.pad(ss, ((0, 0), (0, N_pad - N)))

    return dict(w_i8=w_i8, ss=ss, N=N, K=K, N_pad=N_pad, K_pad=K_pad,
                tn_max=int(tn_max), tk_max=int(tk_max))


# --------------------------------------------------------------------------
# Forward
# --------------------------------------------------------------------------

def quantizer_linear_forward(x, params, *, compute_dtype=jnp.bfloat16,
                             tm_max=512):
    """QLinear forward:  y = (x @ W.T + bias) * scale[None, :].

    x:      [B, K] activations (output keeps x.dtype)
    params: dict from prepare_qlinear_params (int8 weight, [2,N] scale stack)

    Note: matmul operands are bf16 (x rounded at the boundary; int8 weights
    are exact in bf16), accumulation is f32 on the MXU.  This differs from
    PyTorch's f32 F.linear by <= bf16 rounding of x.
    """
    w_i8, ss = params["w_i8"], params["ss"]
    N, K = params["N"], params["K"]
    N_pad, K_pad = params["N_pad"], params["K_pad"]
    tn_max, tk_max = params["tn_max"], params["tk_max"]

    B, Kx = x.shape
    assert Kx == K, "in_features mismatch between x and weight"
    out_dtype = x.dtype

    # ---- tile selection: divisors of the minimally padded sizes -----------
    B_pad = _round_up(max(B, 1), 16)
    tm = _pick_tile(B_pad, 16, tm_max)
    tn = _pick_tile(N_pad, 128, tn_max)
    tk = _pick_tile(K_pad, 128, tk_max)
    # v7x megacore: if neither M nor N would split, re-split N so both
    # TensorCores get a parallel block (no-op on single-TC v5e/v6e).
    if B_pad // tm == 1 and N_pad // tn == 1 and N_pad >= 256:
        tn = _pick_tile(N_pad, 128, N_pad // 2)

    # ---- per-call activation prep (only x is touched per call) ------------
    xc = x.astype(compute_dtype)
    if B_pad != B or K_pad != K:
        xc = jnp.pad(xc, ((0, B_pad - B), (0, K_pad - K)))

    grid_m = B_pad // tm
    grid_n = N_pad // tn
    grid_k = K_pad // tk

    # ---- VMEM budget: double-buffered x/W/ss/out tiles + f32 accumulator --
    xbytes = np.dtype(compute_dtype).itemsize
    obytes = np.dtype(out_dtype).itemsize
    vmem_est = (2 * (tm * tk * xbytes + tn * tk * 1 + 2 * tn * 4
                     + tm * tn * obytes) + tm * tn * 4)
    vmem_limit = int(min(max(2 * vmem_est, 16 << 20), 40 << 20))

    if grid_k == 1:
        # Single K tile: no reduction axis, no accumulator scratch.
        grid = (grid_m, grid_n)
        in_specs = [
            pl.BlockSpec((tm, K_pad), lambda i, j: (i, 0)),   # x
            pl.BlockSpec((tn, K_pad), lambda i, j: (j, 0)),   # W int8 [N,K]
            pl.BlockSpec((2, tn), lambda i, j: (0, j)),       # [scale; bias*scale]
        ]
        out_specs = pl.BlockSpec((tm, tn), lambda i, j: (i, j))
        scratch = []
        kernel = qlinear_single_k_kernel
        semantics = ("parallel", "parallel")
    else:
        grid = (grid_m, grid_n, grid_k)
        in_specs = [
            pl.BlockSpec((tm, tk), lambda i, j, k: (i, k)),   # x
            pl.BlockSpec((tn, tk), lambda i, j, k: (j, k)),   # W int8 [N,K]
            pl.BlockSpec((2, tn), lambda i, j, k: (0, j)),    # [scale; bias*scale]
        ]
        out_specs = pl.BlockSpec((tm, tn), lambda i, j, k: (i, j))
        scratch = [pltpu.VMEM((tm, tn), jnp.float32)]
        kernel = qlinear_acc_kernel
        semantics = ("parallel", "parallel", "arbitrary")

    out = pl.pallas_call(
        kernel,
        out_shape=jax.ShapeDtypeStruct((B_pad, N_pad), out_dtype),
        grid_spec=pltpu.PrefetchScalarGridSpec(
            num_scalar_prefetch=0,
            grid=grid,
            in_specs=in_specs,
            out_specs=out_specs,
            scratch_shapes=scratch,
        ),
        compiler_params=pltpu.CompilerParams(
            dimension_semantics=semantics,
            vmem_limit_bytes=vmem_limit,
        ),
    )(xc, w_i8, ss)

    return out[:B, :N]


if __name__ == "__main__":
    # Small, intentionally non-tile-aligned shapes (exercise padding + both
    # the single-K-tile and the K-reduction kernel paths).
    B, IN_FEATURES, OUT_FEATURES = 5, 200, 320

    key = jax.random.PRNGKey(0)
    kx, kw, kb = jax.random.split(key, 3)

    x = jax.random.normal(kx, (B, IN_FEATURES), dtype=jnp.float32)

    # Synthetic "quantized" weight buffer as produced by from_float/quantize:
    # int8-valued numbers stored in fp16, plus per-out-channel symmetric scale.
    w_fp = jax.random.normal(kw, (OUT_FEATURES, IN_FEATURES), dtype=jnp.float32)
    scale = jnp.max(jnp.abs(w_fp), axis=1) / 127.0                    # [N]
    weight_q = jnp.round(w_fp / scale[:, None]).astype(jnp.float16)   # [N, K]
    bias = jax.random.normal(kb, (OUT_FEATURES,), dtype=jnp.float32)

    # Pure-JAX reference of the PyTorch forward semantics, with matching
    # bf16 rounding of x (kernel computes bf16 x bf16 -> f32 on the MXU;
    # the int8/bf16 weight values are exact).
    xb = x.astype(jnp.bfloat16).astype(jnp.float32)
    wq32 = weight_q.astype(jnp.float32)
    y_ref = (jnp.dot(xb, wq32.T, precision=lax.Precision.HIGHEST)
             + bias[None, :]) * scale[None, :]

    # Path 1: K fits one tile -> single-K kernel (no accumulator scratch).
    params = prepare_qlinear_params(weight_q, bias, scale)
    y1 = jax.block_until_ready(quantizer_linear_forward(x, params))
    np.testing.assert_allclose(np.asarray(y1), np.asarray(y_ref),
                               rtol=1e-2, atol=1e-2)

    # Path 2: force multiple K tiles -> accumulator / reduction-axis kernel.
    params_multi_k = prepare_qlinear_params(weight_q, bias, scale, tk_max=128)
    y2 = jax.block_until_ready(quantizer_linear_forward(x, params_multi_k))
    np.testing.assert_allclose(np.asarray(y2), np.asarray(y_ref),
                               rtol=1e-2, atol=1e-2)

    print("KERNEL_OK")
</pallas_src>

<mosaic_0001>
module attributes {stable_mosaic.version = 11 : i64} {
  func.func @qlinear_single_k_kernel(%arg0: i32, %arg1: i32, %arg2: memref<16x256xbf16, #tpu.memory_space<vmem>>, %arg3: memref<128x256xi8, #tpu.memory_space<vmem>>, %arg4: memref<2x128xf32, #tpu.memory_space<vmem>>, %arg5: memref<16x128xf32, #tpu.memory_space<vmem>>) attributes {dimension_semantics = [#tpu.dimension_semantics<parallel>, #tpu.dimension_semantics<parallel>], iteration_bounds = array<i64: 1, 3>, scalar_prefetch = 0 : i64, scratch_operands = 0 : i64, tpu.core_type = #tpu.core_type<tc>, window_params = [{transform_indices = @transform_0, window_bounds = array<i64: 16, 256>}, {transform_indices = @transform_1, window_bounds = array<i64: 128, 256>}, {transform_indices = @transform_2, window_bounds = array<i64: 2, 128>}, {transform_indices = @transform_3, window_bounds = array<i64: 16, 128>}]} {
    %c0 = arith.constant 0 : index
    %c0_0 = arith.constant 0 : index
    %0 = vector.load %arg2[%c0, %c0_0] : memref<16x256xbf16, #tpu.memory_space<vmem>>, vector<16x256xbf16>
    %c0_1 = arith.constant 0 : index
    %c0_2 = arith.constant 0 : index
    %1 = vector.load %arg3[%c0_1, %c0_2] : memref<128x256xi8, #tpu.memory_space<vmem>>, vector<128x256xi8>
    %2 = arith.sitofp %1 : vector<128x256xi8> to vector<128x256xbf16>
    %cst = arith.constant dense<0.000000e+00> : vector<16x128xf32>
    %3 = tpu.matmul %0, %2, %cst {dimension_numbers = #tpu.dot_dimension_numbers<[1], [1], [0], [0], [0, 0, 1, 0], [], []>} : vector<16x256xbf16>, vector<128x256xbf16>, vector<16x128xf32> -> vector<16x128xf32>
    %c0_3 = arith.constant 0 : index
    %c0_4 = arith.constant 0 : index
    %4 = vector.load %arg4[%c0_3, %c0_4] : memref<2x128xf32, #tpu.memory_space<vmem>>, vector<1x128xf32>
    %c1 = arith.constant 1 : index
    %c0_5 = arith.constant 0 : index
    %5 = vector.load %arg4[%c1, %c0_5] : memref<2x128xf32, #tpu.memory_space<vmem>>, vector<1x128xf32>
    %6 = vector.broadcast %4 : vector<1x128xf32> to vector<16x128xf32>
    %7 = arith.mulf %3, %6 : vector<16x128xf32>
    %8 = vector.broadcast %5 : vector<1x128xf32> to vector<16x128xf32>
    %9 = arith.addf %7, %8 : vector<16x128xf32>
    %c0_6 = arith.constant 0 : index
    %c0_7 = arith.constant 0 : index
    %10 = vector.load %arg5[%c0_6, %c0_7] : memref<16x128xf32, #tpu.memory_space<vmem>>, vector<16x128xf32>
    tpu.vector_store %arg5[%c0_6, %c0_7], %9 {strides = array<i32>} : memref<16x128xf32, #tpu.memory_space<vmem>>, vector<16x128xf32>,
    return
  }
  func.func @transform_0(%arg0: i32, %arg1: i32) -> (i32, i32) {
    %c0_i32 = arith.constant 0 : i32
    %c0_i32_0 = arith.constant 0 : i32
    return %arg0, %c0_i32 : i32, i32
  }
  func.func @transform_1(%arg0: i32, %arg1: i32) -> (i32, i32) {
    %c0_i32 = arith.constant 0 : i32
    %c0_i32_0 = arith.constant 0 : i32
    return %arg1, %c0_i32 : i32, i32
  }
  func.func @transform_2(%arg0: i32, %arg1: i32) -> (i32, i32) {
    %c0_i32 = arith.constant 0 : i32
    %c0_i32_0 = arith.constant 0 : i32
    return %c0_i32, %arg1 : i32, i32
  }
  func.func @transform_3(%arg0: i32, %arg1: i32) -> (i32, i32) {
    %c0_i32 = arith.constant 0 : i32
    return %arg0, %arg1 : i32, i32
  }
}

</mosaic_0001>

<bundles_post_ra>
// kernel: tpu_custom_call.1
= control target key start
LH: loop header
LB: loop body
LE: loop exit
PB: predicated region body
PF: predicated region fallthrough
CT: control target
= control target key end

     0   :  { %8 = vsyncpa [#allocation3], 0  ;;  %s983_s0 = inlined_call_operand.hbm [shape: bf16[16,256], index: 0, kind: input, shape index: {}]   ;;  %s984_s1 = inlined_call_operand.hbm [shape: s8[384,256], index: 1, kind: input, shape index: {}]   ;;  %s985_s2 = inlined_call_operand.vmem [shape: f32[2,384], index: 2, kind: input, shape index: {}]   ;;  %s986_s3 = inlined_call_operand.hbm [shape: f32[16,384], index: 3, kind: output, shape index: {}]  }
   0x1   :  { %9 = vsyncpa [#allocation6], 0 }
   0x2   :  { %11 = vsyncpa [#allocation6 + $0x1], 0 }
   0x3   :  { %12 = vsyncpa [#allocation4], 0 }
   0x4   :  { %14 = vsyncpa [#allocation4 + $0x1], 0  ;;  %s750_s12 = smov 0   ;;  %s752_s13 = smov 0  }
   0x5   :  { %s754_s14 = smov 0   ;;  %s756_s15 = smov 0  }
   0x6   :  { %s758_s16 = smov 0   ;;  %s760_s17 = smov 0  }
   0x7 LB: > { %s467_s18 = sadd.s32 4294967295, %s718_s17   ;;  %s468_s19 = sadd.s32 4294967294, %s718_s17   ;;  %s718_s17 = sphi %s760_s17, %s20_s17   ;;  %s714_s16 = sphi %s758_s16, %s1009_s16   ;;  %s710_s15 = sphi %s756_s15, %s1008_s15   ;;  %s706_s14 = sphi %s754_s14, %s1007_s14   ;;  %s702_s13 = sphi %s752_s13, %s1006_s13   ;;  %s698_s12 = sphi %s750_s12, %s1005_s12  }
   0x8   : > { %p78_p0 = scmp.ne.s32.totalorder %s702_s13, %s698_s12  ;;  %p784_p1 = scmp.eq.s32.totalorder %s467_s18, 0 }
   0x9   : > { %p788_p2 = scmp.eq.s32.totalorder %s467_s18, 2  ;;  %p136_p3 = scmp.eq.s32.totalorder %s468_s19, 2 }
   0xa   : > { %s991_s20 = scalar_select %p784_p1, 1, 0 }
   0xb   : > { %s992_s21 = scalar_select %p788_p2, 1, 0 }
   0xc   : > { %p794_p4 = por %p784_p1, %p78_p0  ;;  %p469_p5 = scmp.ge.s32.totalorder %s718_s17, 1 }
   0xd   : > { %p799_p6 = por %p136_p3, %p78_p0  ;;  %p143_p7 = scmp.lt.s32.totalorder %s718_s17, 4 }
   0xe   : > { %s993_s22 = scalar_select %p794_p4, 1, 0 }
   0xf   : > { %s994_s23 = scalar_select %p799_p6, 1, 0 }
  0x10   : > { %p804_p8 = pnand %p469_p5, %p143_p7  ;;  %s720_s25 = smov [#allocation2]  }
  0x11   : > { %s159_s26 = sshll.u32 %s720_s25, 4  ;;  %s29_s28 = sadd.s32 1, %s714_s16  ;;  %s160_s26 = int_to_ptr.vmem [resolvable:$true] %s159_s26 }
  0x12   : > { %s995_s24 = scalar_select %p804_p8, 1, 0 }
  0x13   : > { %p499_p9 = pneg %p804_p8  ;;  %s574_s4 = scalar_lea.hbm %s983_s0, 256 }
  0x14   : > { %p575_p11 = scmp.ne.s32.totalorder %s983_s0, %s574_s4  ;;  %p581_p3 = scmp.lt.u32.totalorder %s574_s4, %s983_s0 }
  0x15   : > { %p812_p10 = pnand %p499_p9, %p784_p1 }
  0x17   : > { %p576_p12 = pneg %p812_p10 }
  0x19   : > { %p577_p13 = pnand %p576_p12, %p575_p11 }
  0x1b   : > { %p578_p0 = pneg %p577_p13 }
  0x1d   : > { %p583_p5 = pnand %p581_p3, %p578_p0 }
  0x1f   : > { %586 = shalt.err (!%p583_p5)
}
  0x20   : > { %s587_s9 = scalar_lea.vmem %s160_s26, 256  ;;  %p595_p4 = scmp.lt.s32.totalorder %s160_s26, %s160_s26 }
  0x21   : > { %p588_p7 = scmp.ne.s32.totalorder %s160_s26, %s587_s9  ;;  %p596_p1 = scmp.lt.s32.totalorder %s587_s9, %s587_s9 }
  0x23   : > { %p590_p9 = pnand %p588_p7, %p576_p12  ;;  %p597_p8 = por %p596_p1, %p595_p4 }
  0x25   : > { %p591_p6 = pneg %p590_p9 }
  0x27   : > { %p598_p2 = pnand %p597_p8, %p591_p6 }
  0x29   : > { %601 = shalt.err (!%p598_p2)
}
  0x2a   : > { %s721_s10 = smov 128   ;;  %s722_s11 = smov 8  }
  0x2b   : > { %502 = dma.hbm_to_vmem [thread:$0]  (!%p812_p10), %s983_s0, 256, %s160_s26, [#allocation3], %s721_s10, %s721_s10, %s722_s11  }
  0x2c   : > { %p30_p1 = scmp.ge.s32.totalorder %s29_s28, 3  ;;  %s65_s25 = sadd.s32 1, %s706_s14 }
  0x2d   : > { %p72_p2 = scmp.ne.s32.totalorder %s706_s14, %s702_s13  ;;  %p73_p4 = scmp.eq.s32.totalorder %s718_s17, 0 }
  0x2e   : > { %s1011_s28 = smov (%p30_p1, %s29_s28), 0  ;;  %p998_p8 = scmp.ne.s32.totalorder %s992_s21, 0 }
  0x2f   : > { %p839_p6 = por %p73_p4, %p72_p2  ;;  %s62_s27 = ssub.s32 %s714_s16, %s1011_s28 }
  0x30   : > { %p845_p11 = por %p998_p8, %p72_p2  ;;  %p512_p12 = scmp.lt.s32.totalorder %s718_s17, 3 }
  0x31   : > { %p63_p10 = scmp.eq.s32.totalorder %s62_s27, 0  ;;  %s173_s26 = sand.u32 1, %s706_s14  }
  0x32   : > { %s472_s4 = sshll.u32 %s173_s26, 6  ;;  %s490_s6 = sshll.u32 %s714_s16, 10 }
  0x33   : > { %s854_s5 = scalar_select %p63_p10, %s706_s14, %s65_s25  }
  0x34   : > { %s860_s9 = scalar_lea.hbm %s984_s1, %s490_s6  ;;  %s177_s21 = scalar_lea.vmem [#allocation5], %s472_s4 }
  0x35   : > { %s185_s10 = sshll.u32 %s177_s21, 4  ;;  %p866_p13 = pnand %p512_p12, %p839_p6  ;;  %s862_s10 = int_to_ptr.vmem [resolvable:$true] %s185_s10 }
  0x36   : > { %s870_s18 = scalar_lea.sflag [#allocation6], %s173_s26  ;;  %s602_s19 = scalar_lea.hbm %s860_s9, 1024 }
  0x37   : > { %p603_p0 = scmp.ne.s32.totalorder %s860_s9, %s602_s19  ;;  %p604_p3 = pneg %p866_p13 }
  0x38   : > { %s607_s29 = scalar_lea.hbm %s984_s1, 3072  ;;  %p608_p9 = scmp.lt.u32.totalorder %s860_s9, %s984_s1 }
  0x39   : > { %p605_p5 = pnand %p604_p3, %p603_p0  ;;  %p609_p1 = scmp.lt.u32.totalorder %s607_s29, %s602_s19 }
  0x3a   : > { %p611_p4 = scmp.lt.u32.totalorder %s602_s19, %s860_s9 }
  0x3b   : > { %p606_p7 = pneg %p605_p5  ;;  %p610_p2 = por %p609_p1, %p608_p9 }
  0x3d   : > { %p612_p6 = por %p611_p4, %p610_p2 }
  0x3f   : > { %p613_p8 = pnand %p612_p6, %p606_p7 }
  0x41   : > { %616 = shalt.err (!%p613_p8)
}
  0x42   : > { %s617_s26 = scalar_lea.vmem %s862_s10, 1024  ;;  %s723_s7 = smov [#allocation5]  }
  0x43   : > { %p618_p12 = scmp.ne.s32.totalorder %s862_s10, %s617_s26  ;;  %s622_s8 = sshll.u32 %s723_s7, 4  ;;  %s623_s8 = int_to_ptr.vmem [resolvable:$false] %s622_s8 }
  0x44   : > { %s624_s21 = scalar_lea.vmem %s623_s8, 2048  ;;  %p625_p5 = scmp.lt.s32.totalorder %s862_s10, %s623_s8 }
  0x45   : > { %p620_p10 = pnand %p618_p12, %p604_p3  ;;  %p626_p9 = scmp.lt.s32.totalorder %s624_s21, %s617_s26 }
  0x47   : > { %p621_p0 = pneg %p620_p10  ;;  %p627_p1 = por %p626_p9, %p625_p5 }
  0x49   : > { %p628_p2 = pnand %p627_p1, %p621_p0 }
  0x4b   : > { %631 = shalt.err (!%p628_p2)
}
  0x4c   : > { %s724_s19 = smov 256   ;;  %s725_s25 = smov 16  }
  0x4d   : > { %506 = dma.hbm_to_vmem [thread:$0]  (!%p866_p13), %s860_s9, 1024, %s862_s10, %s870_s18, %s724_s19, %s724_s19, %s725_s25  }
  0x4e   : > { %p1001_p3 = scmp.ne.s32.totalorder %s995_s24, 0 }
  0x4f   : > { %p1002_p7 = scmp.ne.s32.totalorder (!%p1001_p3), %s991_s20, 0 }
  0x50   : > { %204 = sbr.rel (%p1001_p3) target bundleno = 393 (0x189), region = 32 }
  0x57   : > { %685 = dma.done.wait (%p1002_p7), [#allocation3], 256  }
  0x58   : > { %687 = vsyncadd (%p1002_p7), [#allocation3], 4294967040  ;;  %s905_s27 = sand.u32 1, %s702_s13   ;;  %p1003_p13 = scmp.ne.s32.totalorder %s993_s22, 0 }
  0x59   : > { %s478_s29 = sshll.u32 %s905_s27, 6  ;;  %s211_s4 = scalar_lea.sflag [#allocation6], %s905_s27 }
  0x5a   : > { %s909_s6 = scalar_lea.vmem [#allocation5], %s478_s29 }
  0x5b   : > { %689 = dma.done.wait (%p1003_p13), %s211_s4, 1024  }
  0x5c   : > { %691 = vsyncadd (%p1003_p13), %s211_s4, 4294966272  ;;  %v252_v0 = vld [vmem:[%s909_s6 + $0x8] sm:$0xff]  ;;  %v251_v1 = vld [vmem:[%s909_s6] sm:$0xff]  ;;  %p243_p4 = scmp.lt.s32.totalorder %s710_s15, 2  ;;  %s479_s24 = sshll.u32 %s905_s27, 4 }
  0x5d   : > { %v260_v2 = vunpack.c.l.s8.bf16 %v252_v0  ;;  %v262_v3 = vunpack.c.h.s8.bf16 %v252_v0  ;;  %v259_v4 = vunpack.c.l.s8.bf16 %v251_v1  ;;  %v573_v5 = vld [vmem:[#allocation2 + $0x4] ss:$8 sps:$4 sm:$0xff]   ;;  %v261_v7 = vunpack.c.h.s8.bf16 %v251_v1  ;;  %v256_v12 = vld [vmem:[%s909_s6 + $0x28] sm:$0xff]  ;;  %v255_v15 = vld [vmem:[%s909_s6 + $0x20] sm:$0xff]  ;;  %s240_s18 = scalar_lea.vmem [#allocation7], %s479_s24  ;;  %s486_s7 = sshll.u32 %s710_s15, 7 }
  0x5e   : > { %317 = vmatprep.mubr.bf16.mxu0 %v573_v5  ;;  %v254_v6 = vld [vmem:[%s909_s6 + $0x18] sm:$0xff]  ;;  %v253_v9 = vld [vmem:[%s909_s6 + $0x10] sm:$0xff]  ;;  %v268_v14 = vunpack.c.l.s8.bf16 %v256_v12  ;;  %v267_v16 = vunpack.c.l.s8.bf16 %v255_v15  ;;  %v270_v17 = vunpack.c.h.s8.bf16 %v256_v12  ;;  %v269_v19 = vunpack.c.h.s8.bf16 %v255_v15  ;;  %s244_s20 = scalar_select %p243_p4, %s710_s15, 2 }
  0x5f   : > { %285 = vmatprep.subr.bf16.mxu0 %v260_v2  ;;  %v264_v8 = vunpack.c.l.s8.bf16 %v254_v6  ;;  %v263_v10 = vunpack.c.l.s8.bf16 %v253_v9  ;;  %v266_v11 = vunpack.c.h.s8.bf16 %v254_v6  ;;  %v265_v13 = vunpack.c.h.s8.bf16 %v253_v9  ;;  %v258_v18 = vld [vmem:[%s909_s6 + $0x38] sm:$0xff]  ;;  %v257_v21 = vld [vmem:[%s909_s6 + $0x30] sm:$0xff]  ;;  %s358_s26 = sshll.u32 %s240_s18, 4  ;;  %s935_s19 = scalar_lea.hbm %s986_s3, %s486_s7  ;;  %s930_s26 = int_to_ptr.vmem [resolvable:$true] %s358_s26 }
  0x60   : > { %286 = vmatpush1.bf16.xpose.msra.mxu0 %v259_v4  ;;  %v272_v20 = vunpack.c.l.s8.bf16 %v258_v18  ;;  %v271_v22 = vunpack.c.l.s8.bf16 %v257_v21  ;;  %v274_v23 = vunpack.c.h.s8.bf16 %v258_v18  ;;  %v273_v24 = vunpack.c.h.s8.bf16 %v257_v21  ;;  %v571_v25 = vld [vmem:[#allocation2] ss:$8 sps:$4 sm:$0xff]   ;;  %s480_s22 = sshll.u32 %s244_s20, 1  ;;  %s343_s25 = scalar_lea.sflag [#allocation4], %s905_s27 }
  0x61   : > { %287 = vmatprep.subr.bf16.mxu0 %v262_v3  ;;  %s246_s11 = scalar_lea.vmem %s985_s2, %s480_s22  ;;  %s632_s29 = scalar_lea.vmem %s930_s26, 256 }
  0x62   : > { %v483_v26 = vld [vmem:[%s246_s11] ss:$0 sm:$0xff]  ;;  %v484_v28 = vld [vmem:[%s246_s11 + $0x1] ss:$0 sm:$0xff]  ;;  %p633_p6 = scmp.ne.s32.totalorder %s930_s26, %s632_s29  ;;  %s726_s15 = smov [#allocation7]  }
  0x63   : > { %s636_s4 = sshll.u32 %s726_s15, 4  ;;  %s637_s4 = int_to_ptr.vmem [resolvable:$false] %s636_s4 }
  0x64   : > { %p634_p8 = pnand %p633_p6, %p845_p11  ;;  %s638_s6 = scalar_lea.vmem %s637_s4, 512 }
  0x65   : > { %p639_p10 = scmp.lt.s32.totalorder %s930_s26, %s637_s4  ;;  %p640_p0 = scmp.lt.s32.totalorder %s638_s6, %s632_s29 }
  0x66   : > { %p635_p12 = pneg %p634_p8 }
  0x67   : > { %p641_p5 = por %p640_p0, %p639_p10 }
  0x68   : > { %288 = vmatpush1.bf16.xpose.msra.mxu0 %v261_v7 }
  0x69   : > { %289 = vmatprep.subr.bf16.mxu0 %v264_v8  ;;  %p642_p9 = pnand %p641_p5, %p635_p12 }
  0x70   : > { %290 = vmatpush1.bf16.xpose.msra.mxu0 %v263_v10 }
  0x71   : > { %291 = vmatprep.subr.bf16.mxu0 %v266_v11 }
  0x78   : > { %292 = vmatpush1.bf16.xpose.msra.mxu0 %v265_v13 }
  0x79   : > { %293 = vmatprep.subr.bf16.mxu0 %v268_v14 }
  0x80   : > { %294 = vmatpush1.bf16.xpose.msra.mxu0 %v267_v16 }
  0x81   : > { %295 = vmatprep.subr.bf16.mxu0 %v270_v17 }
  0x88   : > { %296 = vmatpush1.bf16.xpose.msra.mxu0 %v269_v19 }
  0x89   : > { %297 = vmatprep.subr.bf16.mxu0 %v272_v20 }
  0x90   : > { %298 = vmatpush1.bf16.xpose.msra.mxu0 %v271_v22 }
  0x91   : > { %299 = vmatprep.subr.bf16.mxu0 %v274_v23 }
  0x98   : > { %300 = vmatpush1.bf16.xpose.msra.mxu0 %v273_v24 }
  0x9f   : > { %318 = vmatmul.mubr.bf16.vlgmr.msra.gmra.mrb[0].mxu0 %v571_v25 }
 0x172   : > { %v319_v27 = vpop.f32.mrb[0].mxu0 }
 0x173   : > { %v332_v29 = vmul.f32 %v483_v26, %v319_v27  ;;  %v321_v30 = vpop.f32.mrb[1].mxu0 }
 0x174   : > { %v322_v31 = vpop.f32.mrb[2].mxu0 }
 0x175   : > { %v338_v32 = vadd.f32 %v484_v28, %v332_v29  ;;  %v333_v33 = vmul.f32 %v483_v26, %v322_v31  ;;  %v324_v34 = vpop.f32.mrb[3].mxu0 }
 0x177   : > { %340 = vst [vmem:[%s240_s18] sm:$0xff] %v338_v32  ;;  %v339_v35 = vadd.f32 %v484_v28, %v333_v33 }
 0x179   : > { %341 = vst [vmem:[%s240_s18 + $0x8] sm:$0xff] %v339_v35 }
 0x17a   : > { %645 = shalt.err (!%p642_p9)
}
 0x17b   : > { %s646_s20 = scalar_lea.hbm %s935_s19, 256  ;;  %s650_s9 = scalar_lea.hbm %s986_s3, 768 }
 0x17c   : > { %p647_p1 = scmp.ne.s32.totalorder %s935_s19, %s646_s20  ;;  %p651_p7 = scmp.lt.u32.totalorder %s935_s19, %s986_s3 }
 0x17d   : > { %p652_p13 = scmp.lt.u32.totalorder %s650_s9, %s646_s20  ;;  %p654_p6 = scmp.lt.u32.totalorder %s646_s20, %s935_s19 }
 0x17e   : > { %p648_p2 = pnand %p647_p1, %p845_p11 }
 0x17f   : > { %p653_p4 = por %p652_p13, %p651_p7 }
 0x180   : > { %p649_p3 = pneg %p648_p2 }
 0x181   : > { %p655_p8 = por %p654_p6, %p653_p4 }
 0x183   : > { %p656_p12 = pnand %p655_p8, %p649_p3 }
 0x185   : > { %659 = shalt.err (!%p656_p12)
}
 0x186   : > { %s727_s18 = smov 128   ;;  %s728_s7 = smov 384  }
 0x187   : > { %s729_s8 = smov 8  }
 0x188   : > { %497 = dma.vmem_to_hbm [thread:$0]  (%p845_p11), %s930_s26, 256, %s935_s19, %s343_s25, %s727_s18, %s728_s7, %s729_s8  }
 0x189 PF: > { %p514_p10 = scmp.ge.s32.totalorder %s718_s17, 2  ;;  %s373_s21 = sand.u32 1, %s698_s12  }
 0x18a   : > { %p1004_p0 = scmp.ne.s32.totalorder %s994_s23, 0  ;;  %s374_s29 = scalar_lea.sflag [#allocation4], %s373_s21 }
 0x18c   : > { %p508_p5 = pnand %p514_p10, %p1004_p0 }
 0x18e   : > { %693 = dma.done.wait (!%p508_p5), %s374_s29, 256  }
 0x18f   : > { %695 = vsyncadd (!%p508_p5), %s374_s29, 4294967040  ;;  %s20_s17 = sadd.s32 1, %s718_s17   ;;  %s1005_s12 = smov %s702_s13 }
 0x190   : > { %p17_p9 = scmp.ge.s32.totalorder %s20_s17, 5   ;;  %s1006_s13 = smov %s706_s14 }
 0x191   : > { %s1007_s14 = smov %s854_s5  ;;  %s1008_s15 = smov %s714_s16 }
 0x192   : > { %s1009_s16 = smov %s1011_s28  ;;  %19 = sbr.rel (!%p17_p9) target bundleno = 7 (0x7), region = 86 }
 0x199   :  { %379 = vsyncpa [#allocation3], 1 }
 0x19a   :  { %381 = vsyncpa [#allocation3 + $0x1], 1 }
 0x19b   :  { %382 = vsyncpa [#allocation6], 1 }
 0x19c   :  { %384 = vsyncpa [#allocation6 + $0x1], 1 }
 0x19d   :  { %385 = vsyncpa [#allocation4], 1 }
 0x19e   :  { %387 = vsyncpa [#allocation4 + $0x1], 1 }

</bundles_post_ra>
